<compile_context>
chip_gen: v6e
topology: v6e:2x2x1
jax: 0.10.0
libtpu: 0.0.40
codegen_flags: <defaults>
</compile_context>

<pallas_src>
import functools

import jax
import jax.numpy as jnp
from jax.experimental import pallas as pl
from jax.experimental.pallas import tpu as pltpu


_TAPS = [(ky, kx) for ky in range(3) for kx in range(3)]


# ---------------------------------------------------------------------------
# Fused kernel: one batch element per grid step.
# ---------------------------------------------------------------------------
def _unet_up_kernel(x1_ref, up_ref, m_ref, w1_ref, b1_ref, w2_ref, b2_ref,
                    o_ref, pad1_ref, pad2_ref, *, img_w, c1, halo):
    """concat + conv3x3+ReLU + conv3x3+ReLU, lane-dense (channel, H*W) layout.

    x1_ref : (1, C1, S)      bf16   skip connection, spatially flattened (S = H*W)
    up_ref : (1, C2, S)      bf16   already-upsampled inputs2 (separable, done in XLA)
    m_ref  : (2, S)          f32    column masks: [0]=x!=0 (kx=0 taps), [1]=x!=W-1 (kx=2)
    w1_ref : (9, Cout, Cin)  bf16   conv1 weights, per tap (tap = ky*3 + kx)
    b1_ref : (Cout, 1)       f32
    w2_ref : (9, Cout, Cout) bf16
    b2_ref : (Cout, 1)       f32
    o_ref  : (1, Cout, S)    bf16
    pad1_ref / pad2_ref : (C, 2*halo + S) bf16 staging buffers (zeroed halo handles
    vertical out-of-bounds taps; halo >= W+1 and 128-aligned for unmasked stores).
    """
    S = x1_ref.shape[2]
    P = halo
    bf16 = jnp.bfloat16
    cin = pad1_ref.shape[0]
    cmid = pad2_ref.shape[0]

    # Zero the halo lanes (128-aligned, full-width stores).  Done every step: the
    # scratch persists, but the batch axis may be megacore-sharded so we cannot
    # safely gate this on program_id(0) == 0.
    pad1_ref[:, :P] = jnp.zeros((cin, P), bf16)
    pad1_ref[:, P + S:] = jnp.zeros((cin, P), bf16)
    pad2_ref[:, :P] = jnp.zeros((cmid, P), bf16)
    pad2_ref[:, P + S:] = jnp.zeros((cmid, P), bf16)

    # Channel concat [inputs1, up(inputs2)] written straight into the staging
    # buffer at lane offset P (aligned stores, no (Cin, S) temporary).
    pad1_ref[:c1, P:P + S] = x1_ref[0]
    pad1_ref[c1:, P:P + S] = up_ref[0]

    m_left = m_ref[0:1, :]     # (1, S): 0 where x == 0
    m_right = m_ref[1:2, :]    # (1, S): 0 where x == W-1

    def conv3x3_relu(pad_ref, w_ref, b_ref):
        cout = w_ref.shape[1]
        acc = jnp.zeros((cout, S), jnp.float32)
        for t, (ky, kx) in enumerate(_TAPS):
            shift = (ky - 1) * img_w + (kx - 1)
            win = pad_ref[:, P + shift:P + shift + S]                # (C, S) bf16
            part = jnp.dot(w_ref[t], win,
                           preferred_element_type=jnp.float32)       # (Cout, S)
            # Horizontal boundary handled post-matmul on the (Cout, S) partial
            # (cheaper than masking the (Cin, S) window); vertical boundary is
            # already zero thanks to the halo, so kx==1 taps need no mask at all.
            if kx == 0:
                part = part * m_left
            elif kx == 2:
                part = part * m_right
            acc = acc + part
        return jnp.maximum(acc + b_ref[...], 0.0)

    h = conv3x3_relu(pad1_ref, w1_ref, b1_ref)                        # conv1 + relu
    pad2_ref[:, P:P + S] = h.astype(bf16)
    out = conv3x3_relu(pad2_ref, w2_ref, b2_ref)                      # conv2 + relu
    o_ref[0] = out.astype(o_ref.dtype)


# ---------------------------------------------------------------------------
# Separable align_corners=True bilinear 2x upsample (tiny XLA matmuls).
# ---------------------------------------------------------------------------
def _bilinear_matrix(out_size, in_size):
    """(out_size, in_size) align_corners=True bilinear interpolation weights."""
    if in_size == 1:
        return jnp.ones((out_size, 1), jnp.float32)
    pos = jnp.arange(out_size, dtype=jnp.float32) * (in_size - 1) / (out_size - 1)
    lo = jnp.clip(jnp.floor(pos).astype(jnp.int32), 0, in_size - 1)
    hi = jnp.clip(lo + 1, 0, in_size - 1)
    frac = pos - lo.astype(jnp.float32)
    return (jax.nn.one_hot(lo, in_size) * (1.0 - frac)[:, None]
            + jax.nn.one_hot(hi, in_size) * frac[:, None])


def _upsample_bilinear2x(x):
    """(N, C, Hh, Wh) -> (N, C, 2Hh, 2Wh) via two separable factor matmuls (f32)."""
    _, _, hh, wh = x.shape
    uh = _bilinear_matrix(2 * hh, hh)            # (H, Hh)
    uw = _bilinear_matrix(2 * wh, wh)            # (W, Wh)
    t = jnp.einsum("nchw,xw->nchx", x.astype(jnp.float32), uw)
    return jnp.einsum("nchx,yh->ncyx", t, uh)


# ---------------------------------------------------------------------------
# unetUp forward (NCHW, matching the PyTorch module)
# ---------------------------------------------------------------------------
def unet_up_forward(inputs1, inputs2, params):
    """inputs1: (N, C1, H, W); inputs2: (N, C2, H//2, W//2)."""
    N, C1, H, W = inputs1.shape
    _, C2, Hh, Wh = inputs2.shape
    assert (H, W) == (2 * Hh, 2 * Wh)
    S = H * W
    Cin = C1 + C2
    Cout = params["w1"].shape[0]
    bf16 = jnp.bfloat16

    # Halo must cover a +-(W+1) lane shift and be 128-aligned (correct for W >= 128).
    P = pl.cdiv(W + 1, 128) * 128

    up_flat = _upsample_bilinear2x(inputs2).astype(bf16).reshape(N, C2, S)
    x1_flat = inputs1.reshape(N, C1, S).astype(bf16)

    # Column masks for the horizontally-shifted taps only.
    xcol = jnp.arange(S, dtype=jnp.int32) % W
    masks = jnp.stack([(xcol != 0), (xcol != W - 1)]).astype(jnp.float32)   # (2, S)

    # Per-tap weight layout: (9, Cout, Cin) with tap index = ky*3 + kx.
    w1 = jnp.transpose(params["w1"], (2, 3, 0, 1)).reshape(9, Cout, Cin).astype(bf16)
    w2 = jnp.transpose(params["w2"], (2, 3, 0, 1)).reshape(9, Cout, Cout).astype(bf16)
    b1 = params["b1"].reshape(Cout, 1).astype(jnp.float32)
    b2 = params["b2"].reshape(Cout, 1).astype(jnp.float32)

    # Explicit VMEM budget (double-buffered I/O + persistent scratch) + cost hint.
    io_bytes = (C1 * S * 2 + C2 * S * 2 + 2 * S * 4 + 9 * Cout * Cin * 2
                + 9 * Cout * Cout * 2 + 2 * Cout * 4 + Cout * S * 2)
    scratch_bytes = (Cin + Cout) * (2 * P + S) * 2
    vmem_limit = int(min(48 * 1024 * 1024,
                         2 * io_bytes + scratch_bytes + 8 * 1024 * 1024))
    flops = 2 * N * S * 9 * Cout * (Cin + Cout)
    bytes_accessed = int(N * (C1 + C2 + Cout) * S * 2 + 2 * S * 4
                         + 9 * Cout * (Cin + Cout) * 2 + 2 * Cout * 4)

    kernel = functools.partial(_unet_up_kernel, img_w=W, c1=C1, halo=P)
    out_flat = pl.pallas_call(
        kernel,
        out_shape=jax.ShapeDtypeStruct((N, Cout, S), bf16),
        grid=(N,),
        in_specs=[
            pl.BlockSpec((1, C1, S), lambda n: (n, 0, 0)),
            pl.BlockSpec((1, C2, S), lambda n: (n, 0, 0)),
            pl.BlockSpec((2, S), lambda n: (0, 0)),
            pl.BlockSpec((9, Cout, Cin), lambda n: (0, 0, 0)),
            pl.BlockSpec((Cout, 1), lambda n: (0, 0)),
            pl.BlockSpec((9, Cout, Cout), lambda n: (0, 0, 0)),
            pl.BlockSpec((Cout, 1), lambda n: (0, 0)),
        ],
        out_specs=pl.BlockSpec((1, Cout, S), lambda n: (n, 0, 0)),
        scratch_shapes=[
            pltpu.VMEM((Cin, 2 * P + S), bf16),
            pltpu.VMEM((Cout, 2 * P + S), bf16),
        ],
        compiler_params=pltpu.CompilerParams(
            dimension_semantics=("parallel",),
            vmem_limit_bytes=vmem_limit),
        cost_estimate=pl.CostEstimate(flops=flops, transcendentals=0,
                                      bytes_accessed=bytes_accessed),
    )(x1_flat, up_flat, masks, w1, b1, w2, b2)

    return out_flat.reshape(N, Cout, H, W)


# ---------------------------------------------------------------------------
# Pure-JAX reference (same bf16 rounding points) for a correctness check.
# ---------------------------------------------------------------------------
def reference_forward(inputs1, inputs2, params):
    f32, bf16 = jnp.float32, jnp.bfloat16
    up = _upsample_bilinear2x(inputs2).astype(bf16).astype(f32)
    x1 = inputs1.astype(bf16).astype(f32)
    cat = jnp.concatenate([x1, up], axis=1)

    def conv_relu(x, w, b):
        y = jax.lax.conv_general_dilated(
            x, w.astype(bf16).astype(f32), window_strides=(1, 1),
            padding=((1, 1), (1, 1)),
            dimension_numbers=("NCHW", "OIHW", "NCHW"))
        return jnp.maximum(y + b.astype(f32)[None, :, None, None], 0.0)

    h = conv_relu(cat, params["w1"], params["b1"]).astype(bf16).astype(f32)
    return conv_relu(h, params["w2"], params["b2"])


def init_params(key, in_size, out_size):
    k1, k2, k3, k4 = jax.random.split(key, 4)
    s1 = 1.0 / jnp.sqrt(in_size * 9.0)
    s2 = 1.0 / jnp.sqrt(out_size * 9.0)
    return {
        "w1": jax.random.normal(k1, (out_size, in_size, 3, 3), jnp.float32) * s1,
        "b1": jax.random.normal(k2, (out_size,), jnp.float32) * s1,
        "w2": jax.random.normal(k3, (out_size, out_size, 3, 3), jnp.float32) * s2,
        "b2": jax.random.normal(k4, (out_size,), jnp.float32) * s2,
    }


if __name__ == "__main__":
    key = jax.random.PRNGKey(0)
    k_in1, k_in2, k_par = jax.random.split(key, 3)

    N, H, W = 2, 16, 16
    C1, C2 = 8, 8                      # channels of inputs1 and inputs2
    in_size, out_size = C1 + C2, 8     # conv1 input channels, module out channels

    inputs1 = jax.random.normal(k_in1, (N, C1, H, W), jnp.float32)            # NCHW
    inputs2 = jax.random.normal(k_in2, (N, C2, H // 2, W // 2), jnp.float32)
    params = init_params(k_par, in_size, out_size)

    fwd = jax.jit(unet_up_forward)
    out = jax.block_until_ready(fwd(inputs1, inputs2, params))

    assert out.shape == (N, out_size, H, W)
    assert out.dtype == jnp.bfloat16
    assert bool(jnp.all(out.astype(jnp.float32) >= 0.0))          # ReLU output
    ref = reference_forward(inputs1, inputs2, params)
    max_err = float(jnp.max(jnp.abs(out.astype(jnp.float32) - ref)))
    assert max_err < 5e-2, f"mismatch vs reference: max abs err {max_err}"
    print("KERNEL_OK")
</pallas_src>

<mosaic_0001>
module attributes {stable_mosaic.version = 11 : i64} {
  func.func @_unet_up_kernel(%arg0: i32, %arg1: memref<1x8x256xbf16, #tpu.memory_space<vmem>>, %arg2: memref<1x8x256xbf16, #tpu.memory_space<vmem>>, %arg3: memref<2x256xf32, #tpu.memory_space<vmem>>, %arg4: memref<9x8x16xbf16, #tpu.memory_space<vmem>>, %arg5: memref<8x1xf32, #tpu.memory_space<vmem>>, %arg6: memref<9x8x8xbf16, #tpu.memory_space<vmem>>, %arg7: memref<8x1xf32, #tpu.memory_space<vmem>>, %arg8: memref<1x8x256xbf16, #tpu.memory_space<vmem>>, %arg9: memref<16x512xbf16, #tpu.memory_space<vmem>>, %arg10: memref<8x512xbf16, #tpu.memory_space<vmem>>) attributes {dimension_semantics = [#tpu.dimension_semantics<parallel>], iteration_bounds = array<i64: 2>, scalar_prefetch = 0 : i64, scratch_operands = 2 : i64, tpu.core_type = #tpu.core_type<tc>, window_params = [{transform_indices = @transform_0, window_bounds = array<i64: 1, 8, 256>}, {transform_indices = @transform_1, window_bounds = array<i64: 1, 8, 256>}, {pipeline_mode = #tpu.pipeline_mode<synchronous>, transform_indices = @transform_2, window_bounds = array<i64: 2, 256>}, {pipeline_mode = #tpu.pipeline_mode<synchronous>, transform_indices = @transform_3, window_bounds = array<i64: 9, 8, 16>}, {pipeline_mode = #tpu.pipeline_mode<synchronous>, transform_indices = @transform_4, window_bounds = array<i64: 8, 1>}, {pipeline_mode = #tpu.pipeline_mode<synchronous>, transform_indices = @transform_5, window_bounds = array<i64: 9, 8, 8>}, {pipeline_mode = #tpu.pipeline_mode<synchronous>, transform_indices = @transform_6, window_bounds = array<i64: 8, 1>}, {transform_indices = @transform_7, window_bounds = array<i64: 1, 8, 256>}]} {
    %cst = arith.constant 0.000000e+00 : bf16
    %0 = vector.broadcast %cst : bf16 to vector<16x128xbf16>
    %c0 = arith.constant 0 : index
    %c0_0 = arith.constant 0 : index
    %1 = vector.load %arg9[%c0, %c0_0] : memref<16x512xbf16, #tpu.memory_space<vmem>>, vector<16x128xbf16>
    tpu.vector_store %arg9[%c0, %c0_0], %0 {strides = array<i32>} : memref<16x512xbf16, #tpu.memory_space<vmem>>, vector<16x128xbf16>,
    %cst_1 = arith.constant 0.000000e+00 : bf16
    %2 = vector.broadcast %cst_1 : bf16 to vector<16x128xbf16>
    %c0_2 = arith.constant 0 : index
    %c384 = arith.constant 384 : index
    %3 = vector.load %arg9[%c0_2, %c384] : memref<16x512xbf16, #tpu.memory_space<vmem>>, vector<16x128xbf16>
    tpu.vector_store %arg9[%c0_2, %c384], %2 {strides = array<i32>} : memref<16x512xbf16, #tpu.memory_space<vmem>>, vector<16x128xbf16>,
    %cst_3 = arith.constant 0.000000e+00 : bf16
    %4 = vector.broadcast %cst_3 : bf16 to vector<8x128xbf16>
    %c0_4 = arith.constant 0 : index
    %c0_5 = arith.constant 0 : index
    %5 = vector.load %arg10[%c0_4, %c0_5] : memref<8x512xbf16, #tpu.memory_space<vmem>>, vector<8x128xbf16>
    tpu.vector_store %arg10[%c0_4, %c0_5], %4 {strides = array<i32>} : memref<8x512xbf16, #tpu.memory_space<vmem>>, vector<8x128xbf16>,
    %cst_6 = arith.constant 0.000000e+00 : bf16
    %6 = vector.broadcast %cst_6 : bf16 to vector<8x128xbf16>
    %c0_7 = arith.constant 0 : index
    %c384_8 = arith.constant 384 : index
    %7 = vector.load %arg10[%c0_7, %c384_8] : memref<8x512xbf16, #tpu.memory_space<vmem>>, vector<8x128xbf16>
    tpu.vector_store %arg10[%c0_7, %c384_8], %6 {strides = array<i32>} : memref<8x512xbf16, #tpu.memory_space<vmem>>, vector<8x128xbf16>,
    %c0_9 = arith.constant 0 : index
    %c0_10 = arith.constant 0 : index
    %c0_11 = arith.constant 0 : index
    %8 = vector.load %arg1[%c0_9, %c0_10, %c0_11] : memref<1x8x256xbf16, #tpu.memory_space<vmem>>, vector<1x8x256xbf16>
    %9 = vector.shape_cast %8 : vector<1x8x256xbf16> to vector<8x256xbf16>
    %c0_12 = arith.constant 0 : index
    %c128 = arith.constant 128 : index
    %10 = vector.load %arg9[%c0_12, %c128] : memref<16x512xbf16, #tpu.memory_space<vmem>>, vector<8x256xbf16>
    tpu.vector_store %arg9[%c0_12, %c128], %9 {strides = array<i32>} : memref<16x512xbf16, #tpu.memory_space<vmem>>, vector<8x256xbf16>,
    %c0_13 = arith.constant 0 : index
    %c0_14 = arith.constant 0 : index
    %c0_15 = arith.constant 0 : index
    %11 = vector.load %arg2[%c0_13, %c0_14, %c0_15] : memref<1x8x256xbf16, #tpu.memory_space<vmem>>, vector<1x8x256xbf16>
    %12 = vector.shape_cast %11 : vector<1x8x256xbf16> to vector<8x256xbf16>
    %c8 = arith.constant 8 : index
    %c128_16 = arith.constant 128 : index
    %13 = vector.load %arg9[%c8, %c128_16] : memref<16x512xbf16, #tpu.memory_space<vmem>>, vector<8x256xbf16>
    tpu.vector_store %arg9[%c8, %c128_16], %12 {strides = array<i32>} : memref<16x512xbf16, #tpu.memory_space<vmem>>, vector<8x256xbf16>,
    %c0_17 = arith.constant 0 : index
    %c0_18 = arith.constant 0 : index
    %14 = vector.load %arg3[%c0_17, %c0_18] : memref<2x256xf32, #tpu.memory_space<vmem>>, vector<1x256xf32>
    %c1 = arith.constant 1 : index
    %c0_19 = arith.constant 0 : index
    %15 = vector.load %arg3[%c1, %c0_19] : memref<2x256xf32, #tpu.memory_space<vmem>>, vector<1x256xf32>
    %cst_20 = arith.constant 0.000000e+00 : f32
    %16 = vector.broadcast %cst_20 : f32 to vector<8x256xf32>
    %c0_21 = arith.constant 0 : index
    %c111 = arith.constant 111 : index
    %17 = vector.load %arg9[%c0_21, %c111] : memref<16x512xbf16, #tpu.memory_space<vmem>>, vector<16x256xbf16>
    %c0_22 = arith.constant 0 : index
    %c0_23 = arith.constant 0 : index
    %c0_24 = arith.constant 0 : index
    %18 = vector.load %arg4[%c0_22, %c0_23, %c0_24] : memref<9x8x16xbf16, #tpu.memory_space<vmem>>, vector<1x8x16xbf16>
    %19 = vector.shape_cast %18 : vector<1x8x16xbf16> to vector<8x16xbf16>
    %cst_25 = arith.constant dense<0.000000e+00> : vector<8x256xf32>
    %20 = tpu.matmul %19, %17, %cst_25 {dimension_numbers = #tpu.dot_dimension_numbers<[1], [0], [0], [1], [0, 0, 1, 1], [], []>} : vector<8x16xbf16>, vector<16x256xbf16>, vector<8x256xf32> -> vector<8x256xf32>
    %21 = vector.broadcast %14 : vector<1x256xf32> to vector<8x256xf32>
    %22 = arith.mulf %20, %21 : vector<8x256xf32>
    %23 = arith.addf %16, %22 : vector<8x256xf32>
    %c0_26 = arith.constant 0 : index
    %c112 = arith.constant 112 : index
    %24 = vector.load %arg9[%c0_26, %c112] : memref<16x512xbf16, #tpu.memory_space<vmem>>, vector<16x256xbf16>
    %c1_27 = arith.constant 1 : index
    %c0_28 = arith.constant 0 : index
    %c0_29 = arith.constant 0 : index
    %25 = vector.load %arg4[%c1_27, %c0_28, %c0_29] : memref<9x8x16xbf16, #tpu.memory_space<vmem>>, vector<1x8x16xbf16>
    %26 = vector.shape_cast %25 : vector<1x8x16xbf16> to vector<8x16xbf16>
    %cst_30 = arith.constant dense<0.000000e+00> : vector<8x256xf32>
    %27 = tpu.matmul %26, %24, %cst_30 {dimension_numbers = #tpu.dot_dimension_numbers<[1], [0], [0], [1], [0, 0, 1, 1], [], []>} : vector<8x16xbf16>, vector<16x256xbf16>, vector<8x256xf32> -> vector<8x256xf32>
    %28 = arith.addf %23, %27 : vector<8x256xf32>
    %c0_31 = arith.constant 0 : index
    %c113 = arith.constant 113 : index
    %29 = vector.load %arg9[%c0_31, %c113] : memref<16x512xbf16, #tpu.memory_space<vmem>>, vector<16x256xbf16>
    %c2 = arith.constant 2 : index
    %c0_32 = arith.constant 0 : index
    %c0_33 = arith.constant 0 : index
    %30 = vector.load %arg4[%c2, %c0_32, %c0_33] : memref<9x8x16xbf16, #tpu.memory_space<vmem>>, vector<1x8x16xbf16>
    %31 = vector.shape_cast %30 : vector<1x8x16xbf16> to vector<8x16xbf16>
    %cst_34 = arith.constant dense<0.000000e+00> : vector<8x256xf32>
    %32 = tpu.matmul %31, %29, %cst_34 {dimension_numbers = #tpu.dot_dimension_numbers<[1], [0], [0], [1], [0, 0, 1, 1], [], []>} : vector<8x16xbf16>, vector<16x256xbf16>, vector<8x256xf32> -> vector<8x256xf32>
    %33 = vector.broadcast %15 : vector<1x256xf32> to vector<8x256xf32>
    %34 = arith.mulf %32, %33 : vector<8x256xf32>
    %35 = arith.addf %28, %34 : vector<8x256xf32>
    %c0_35 = arith.constant 0 : index
    %c127 = arith.constant 127 : index
    %36 = vector.load %arg9[%c0_35, %c127] : memref<16x512xbf16, #tpu.memory_space<vmem>>, vector<16x256xbf16>
    %c3 = arith.constant 3 : index
    %c0_36 = arith.constant 0 : index
    %c0_37 = arith.constant 0 : index
    %37 = vector.load %arg4[%c3, %c0_36, %c0_37] : memref<9x8x16xbf16, #tpu.memory_space<vmem>>, vector<1x8x16xbf16>
    %38 = vector.shape_cast %37 : vector<1x8x16xbf16> to vector<8x16xbf16>
    %cst_38 = arith.constant dense<0.000000e+00> : vector<8x256xf32>
    %39 = tpu.matmul %38, %36, %cst_38 {dimension_numbers = #tpu.dot_dimension_numbers<[1], [0], [0], [1], [0, 0, 1, 1], [], []>} : vector<8x16xbf16>, vector<16x256xbf16>, vector<8x256xf32> -> vector<8x256xf32>
    %40 = vector.broadcast %14 : vector<1x256xf32> to vector<8x256xf32>
    %41 = arith.mulf %39, %40 : vector<8x256xf32>
    %42 = arith.addf %35, %41 : vector<8x256xf32>
    %c0_39 = arith.constant 0 : index
    %c128_40 = arith.constant 128 : index
    %43 = vector.load %arg9[%c0_39, %c128_40] : memref<16x512xbf16, #tpu.memory_space<vmem>>, vector<16x256xbf16>
    %c4 = arith.constant 4 : index
    %c0_41 = arith.constant 0 : index
    %c0_42 = arith.constant 0 : index
    %44 = vector.load %arg4[%c4, %c0_41, %c0_42] : memref<9x8x16xbf16, #tpu.memory_space<vmem>>, vector<1x8x16xbf16>
    %45 = vector.shape_cast %44 : vector<1x8x16xbf16> to vector<8x16xbf16>
    %cst_43 = arith.constant dense<0.000000e+00> : vector<8x256xf32>
    %46 = tpu.matmul %45, %43, %cst_43 {dimension_numbers = #tpu.dot_dimension_numbers<[1], [0], [0], [1], [0, 0, 1, 1], [], []>} : vector<8x16xbf16>, vector<16x256xbf16>, vector<8x256xf32> -> vector<8x256xf32>
    %47 = arith.addf %42, %46 : vector<8x256xf32>
    %c0_44 = arith.constant 0 : index
    %c129 = arith.constant 129 : index
    %48 = vector.load %arg9[%c0_44, %c129] : memref<16x512xbf16, #tpu.memory_space<vmem>>, vector<16x256xbf16>
    %c5 = arith.constant 5 : index
    %c0_45 = arith.constant 0 : index
    %c0_46 = arith.constant 0 : index
    %49 = vector.load %arg4[%c5, %c0_45, %c0_46] : memref<9x8x16xbf16, #tpu.memory_space<vmem>>, vector<1x8x16xbf16>
    %50 = vector.shape_cast %49 : vector<1x8x16xbf16> to vector<8x16xbf16>
    %cst_47 = arith.constant dense<0.000000e+00> : vector<8x256xf32>
    %51 = tpu.matmul %50, %48, %cst_47 {dimension_numbers = #tpu.dot_dimension_numbers<[1], [0], [0], [1], [0, 0, 1, 1], [], []>} : vector<8x16xbf16>, vector<16x256xbf16>, vector<8x256xf32> -> vector<8x256xf32>
    %52 = vector.broadcast %15 : vector<1x256xf32> to vector<8x256xf32>
    %53 = arith.mulf %51, %52 : vector<8x256xf32>
    %54 = arith.addf %47, %53 : vector<8x256xf32>
    %c0_48 = arith.constant 0 : index
    %c143 = arith.constant 143 : index
    %55 = vector.load %arg9[%c0_48, %c143] : memref<16x512xbf16, #tpu.memory_space<vmem>>, vector<16x256xbf16>
    %c6 = arith.constant 6 : index
    %c0_49 = arith.constant 0 : index
    %c0_50 = arith.constant 0 : index
    %56 = vector.load %arg4[%c6, %c0_49, %c0_50] : memref<9x8x16xbf16, #tpu.memory_space<vmem>>, vector<1x8x16xbf16>
    %57 = vector.shape_cast %56 : vector<1x8x16xbf16> to vector<8x16xbf16>
    %cst_51 = arith.constant dense<0.000000e+00> : vector<8x256xf32>
    %58 = tpu.matmul %57, %55, %cst_51 {dimension_numbers = #tpu.dot_dimension_numbers<[1], [0], [0], [1], [0, 0, 1, 1], [], []>} : vector<8x16xbf16>, vector<16x256xbf16>, vector<8x256xf32> -> vector<8x256xf32>
    %59 = vector.broadcast %14 : vector<1x256xf32> to vector<8x256xf32>
    %60 = arith.mulf %58, %59 : vector<8x256xf32>
    %61 = arith.addf %54, %60 : vector<8x256xf32>
    %c0_52 = arith.constant 0 : index
    %c144 = arith.constant 144 : index
    %62 = vector.load %arg9[%c0_52, %c144] : memref<16x512xbf16, #tpu.memory_space<vmem>>, vector<16x256xbf16>
    %c7 = arith.constant 7 : index
    %c0_53 = arith.constant 0 : index
    %c0_54 = arith.constant 0 : index
    %63 = vector.load %arg4[%c7, %c0_53, %c0_54] : memref<9x8x16xbf16, #tpu.memory_space<vmem>>, vector<1x8x16xbf16>
    %64 = vector.shape_cast %63 : vector<1x8x16xbf16> to vector<8x16xbf16>
    %cst_55 = arith.constant dense<0.000000e+00> : vector<8x256xf32>
    %65 = tpu.matmul %64, %62, %cst_55 {dimension_numbers = #tpu.dot_dimension_numbers<[1], [0], [0], [1], [0, 0, 1, 1], [], []>} : vector<8x16xbf16>, vector<16x256xbf16>, vector<8x256xf32> -> vector<8x256xf32>
    %66 = arith.addf %61, %65 : vector<8x256xf32>
    %c0_56 = arith.constant 0 : index
    %c145 = arith.constant 145 : index
    %67 = vector.load %arg9[%c0_56, %c145] : memref<16x512xbf16, #tpu.memory_space<vmem>>, vector<16x256xbf16>
    %c8_57 = arith.constant 8 : index
    %c0_58 = arith.constant 0 : index
    %c0_59 = arith.constant 0 : index
    %68 = vector.load %arg4[%c8_57, %c0_58, %c0_59] : memref<9x8x16xbf16, #tpu.memory_space<vmem>>, vector<1x8x16xbf16>
    %69 = vector.shape_cast %68 : vector<1x8x16xbf16> to vector<8x16xbf16>
    %cst_60 = arith.constant dense<0.000000e+00> : vector<8x256xf32>
    %70 = tpu.matmul %69, %67, %cst_60 {dimension_numbers = #tpu.dot_dimension_numbers<[1], [0], [0], [1], [0, 0, 1, 1], [], []>} : vector<8x16xbf16>, vector<16x256xbf16>, vector<8x256xf32> -> vector<8x256xf32>
    %71 = vector.broadcast %15 : vector<1x256xf32> to vector<8x256xf32>
    %72 = arith.mulf %70, %71 : vector<8x256xf32>
    %73 = arith.addf %66, %72 : vector<8x256xf32>
    %c0_61 = arith.constant 0 : index
    %c0_62 = arith.constant 0 : index
    %74 = vector.load %arg5[%c0_61, %c0_62] : memref<8x1xf32, #tpu.memory_space<vmem>>, vector<8x1xf32>
    %75 = vector.broadcast %74 : vector<8x1xf32> to vector<8x256xf32>
    %76 = arith.addf %73, %75 : vector<8x256xf32>
    %cst_63 = arith.constant 0.000000e+00 : f32
    %77 = vector.broadcast %cst_63 : f32 to vector<8x256xf32>
    %78 = arith.maximumf %76, %77 : vector<8x256xf32>
    %79 = arith.truncf %78 : vector<8x256xf32> to vector<8x256xbf16>
    %c0_64 = arith.constant 0 : index
    %c128_65 = arith.constant 128 : index
    %80 = vector.load %arg10[%c0_64, %c128_65] : memref<8x512xbf16, #tpu.memory_space<vmem>>, vector<8x256xbf16>
    tpu.vector_store %arg10[%c0_64, %c128_65], %79 {strides = array<i32>} : memref<8x512xbf16, #tpu.memory_space<vmem>>, vector<8x256xbf16>,
    %cst_66 = arith.constant 0.000000e+00 : f32
    %81 = vector.broadcast %cst_66 : f32 to vector<8x256xf32>
    %c0_67 = arith.constant 0 : index
    %c111_68 = arith.constant 111 : index
    %82 = vector.load %arg10[%c0_67, %c111_68] : memref<8x512xbf16, #tpu.memory_space<vmem>>, vector<8x256xbf16>
    %c0_69 = arith.constant 0 : index
    %c0_70 = arith.constant 0 : index
    %c0_71 = arith.constant 0 : index
    %83 = vector.load %arg6[%c0_69, %c0_70, %c0_71] : memref<9x8x8xbf16, #tpu.memory_space<vmem>>, vector<1x8x8xbf16>
    %84 = vector.shape_cast %83 : vector<1x8x8xbf16> to vector<8x8xbf16>
    %cst_72 = arith.constant dense<0.000000e+00> : vector<8x256xf32>
    %85 = tpu.matmul %84, %82, %cst_72 {dimension_numbers = #tpu.dot_dimension_numbers<[1], [0], [0], [1], [0, 0, 1, 1], [], []>} : vector<8x8xbf16>, vector<8x256xbf16>, vector<8x256xf32> -> vector<8x256xf32>
    %86 = vector.broadcast %14 : vector<1x256xf32> to vector<8x256xf32>
    %87 = arith.mulf %85, %86 : vector<8x256xf32>
    %88 = arith.addf %81, %87 : vector<8x256xf32>
    %c0_73 = arith.constant 0 : index
    %c112_74 = arith.constant 112 : index
    %89 = vector.load %arg10[%c0_73, %c112_74] : memref<8x512xbf16, #tpu.memory_space<vmem>>, vector<8x256xbf16>
    %c1_75 = arith.constant 1 : index
    %c0_76 = arith.constant 0 : index
    %c0_77 = arith.constant 0 : index
    %90 = vector.load %arg6[%c1_75, %c0_76, %c0_77] : memref<9x8x8xbf16, #tpu.memory_space<vmem>>, vector<1x8x8xbf16>
    %91 = vector.shape_cast %90 : vector<1x8x8xbf16> to vector<8x8xbf16>
    %cst_78 = arith.constant dense<0.000000e+00> : vector<8x256xf32>
    %92 = tpu.matmul %91, %89, %cst_78 {dimension_numbers = #tpu.dot_dimension_numbers<[1], [0], [0], [1], [0, 0, 1, 1], [], []>} : vector<8x8xbf16>, vector<8x256xbf16>, vector<8x256xf32> -> vector<8x256xf32>
    %93 = arith.addf %88, %92 : vector<8x256xf32>
    %c0_79 = arith.constant 0 : index
    %c113_80 = arith.constant 113 : index
    %94 = vector.load %arg10[%c0_79, %c113_80] : memref<8x512xbf16, #tpu.memory_space<vmem>>, vector<8x256xbf16>
    %c2_81 = arith.constant 2 : index
    %c0_82 = arith.constant 0 : index
    %c0_83 = arith.constant 0 : index
    %95 = vector.load %arg6[%c2_81, %c0_82, %c0_83] : memref<9x8x8xbf16, #tpu.memory_space<vmem>>, vector<1x8x8xbf16>
    %96 = vector.shape_cast %95 : vector<1x8x8xbf16> to vector<8x8xbf16>
    %cst_84 = arith.constant dense<0.000000e+00> : vector<8x256xf32>
    %97 = tpu.matmul %96, %94, %cst_84 {dimension_numbers = #tpu.dot_dimension_numbers<[1], [0], [0], [1], [0, 0, 1, 1], [], []>} : vector<8x8xbf16>, vector<8x256xbf16>, vector<8x256xf32> -> vector<8x256xf32>
    %98 = vector.broadcast %15 : vector<1x256xf32> to vector<8x256xf32>
    %99 = arith.mulf %97, %98 : vector<8x256xf32>
    %100 = arith.addf %93, %99 : vector<8x256xf32>
    %c0_85 = arith.constant 0 : index
    %c127_86 = arith.constant 127 : index
    %101 = vector.load %arg10[%c0_85, %c127_86] : memref<8x512xbf16, #tpu.memory_space<vmem>>, vector<8x256xbf16>
    %c3_87 = arith.constant 3 : index
    %c0_88 = arith.constant 0 : index
    %c0_89 = arith.constant 0 : index
    %102 = vector.load %arg6[%c3_87, %c0_88, %c0_89] : memref<9x8x8xbf16, #tpu.memory_space<vmem>>, vector<1x8x8xbf16>
    %103 = vector.shape_cast %102 : vector<1x8x8xbf16> to vector<8x8xbf16>
    %cst_90 = arith.constant dense<0.000000e+00> : vector<8x256xf32>
    %104 = tpu.matmul %103, %101, %cst_90 {dimension_numbers = #tpu.dot_dimension_numbers<[1], [0], [0], [1], [0, 0, 1, 1], [], []>} : vector<8x8xbf16>, vector<8x256xbf16>, vector<8x256xf32> -> vector<8x256xf32>
    %105 = vector.broadcast %14 : vector<1x256xf32> to vector<8x256xf32>
    %106 = arith.mulf %104, %105 : vector<8x256xf32>
    %107 = arith.addf %100, %106 : vector<8x256xf32>
    %c0_91 = arith.constant 0 : index
    %c128_92 = arith.constant 128 : index
    %108 = vector.load %arg10[%c0_91, %c128_92] : memref<8x512xbf16, #tpu.memory_space<vmem>>, vector<8x256xbf16>
    %c4_93 = arith.constant 4 : index
    %c0_94 = arith.constant 0 : index
    %c0_95 = arith.constant 0 : index
    %109 = vector.load %arg6[%c4_93, %c0_94, %c0_95] : memref<9x8x8xbf16, #tpu.memory_space<vmem>>, vector<1x8x8xbf16>
    %110 = vector.shape_cast %109 : vector<1x8x8xbf16> to vector<8x8xbf16>
    %cst_96 = arith.constant dense<0.000000e+00> : vector<8x256xf32>
    %111 = tpu.matmul %110, %108, %cst_96 {dimension_numbers = #tpu.dot_dimension_numbers<[1], [0], [0], [1], [0, 0, 1, 1], [], []>} : vector<8x8xbf16>, vector<8x256xbf16>, vector<8x256xf32> -> vector<8x256xf32>
    %112 = arith.addf %107, %111 : vector<8x256xf32>
    %c0_97 = arith.constant 0 : index
    %c129_98 = arith.constant 129 : index
    %113 = vector.load %arg10[%c0_97, %c129_98] : memref<8x512xbf16, #tpu.memory_space<vmem>>, vector<8x256xbf16>
    %c5_99 = arith.constant 5 : index
    %c0_100 = arith.constant 0 : index
    %c0_101 = arith.constant 0 : index
    %114 = vector.load %arg6[%c5_99, %c0_100, %c0_101] : memref<9x8x8xbf16, #tpu.memory_space<vmem>>, vector<1x8x8xbf16>
    %115 = vector.shape_cast %114 : vector<1x8x8xbf16> to vector<8x8xbf16>
    %cst_102 = arith.constant dense<0.000000e+00> : vector<8x256xf32>
    %116 = tpu.matmul %115, %113, %cst_102 {dimension_numbers = #tpu.dot_dimension_numbers<[1], [0], [0], [1], [0, 0, 1, 1], [], []>} : vector<8x8xbf16>, vector<8x256xbf16>, vector<8x256xf32> -> vector<8x256xf32>
    %117 = vector.broadcast %15 : vector<1x256xf32> to vector<8x256xf32>
    %118 = arith.mulf %116, %117 : vector<8x256xf32>
    %119 = arith.addf %112, %118 : vector<8x256xf32>
    %c0_103 = arith.constant 0 : index
    %c143_104 = arith.constant 143 : index
    %120 = vector.load %arg10[%c0_103, %c143_104] : memref<8x512xbf16, #tpu.memory_space<vmem>>, vector<8x256xbf16>
    %c6_105 = arith.constant 6 : index
    %c0_106 = arith.constant 0 : index
    %c0_107 = arith.constant 0 : index
    %121 = vector.load %arg6[%c6_105, %c0_106, %c0_107] : memref<9x8x8xbf16, #tpu.memory_space<vmem>>, vector<1x8x8xbf16>
    %122 = vector.shape_cast %121 : vector<1x8x8xbf16> to vector<8x8xbf16>
    %cst_108 = arith.constant dense<0.000000e+00> : vector<8x256xf32>
    %123 = tpu.matmul %122, %120, %cst_108 {dimension_numbers = #tpu.dot_dimension_numbers<[1], [0], [0], [1], [0, 0, 1, 1], [], []>} : vector<8x8xbf16>, vector<8x256xbf16>, vector<8x256xf32> -> vector<8x256xf32>
    %124 = vector.broadcast %14 : vector<1x256xf32> to vector<8x256xf32>
    %125 = arith.mulf %123, %124 : vector<8x256xf32>
    %126 = arith.addf %119, %125 : vector<8x256xf32>
    %c0_109 = arith.constant 0 : index
    %c144_110 = arith.constant 144 : index
    %127 = vector.load %arg10[%c0_109, %c144_110] : memref<8x512xbf16, #tpu.memory_space<vmem>>, vector<8x256xbf16>
    %c7_111 = arith.constant 7 : index
    %c0_112 = arith.constant 0 : index
    %c0_113 = arith.constant 0 : index
    %128 = vector.load %arg6[%c7_111, %c0_112, %c0_113] : memref<9x8x8xbf16, #tpu.memory_space<vmem>>, vector<1x8x8xbf16>
    %129 = vector.shape_cast %128 : vector<1x8x8xbf16> to vector<8x8xbf16>
    %cst_114 = arith.constant dense<0.000000e+00> : vector<8x256xf32>
    %130 = tpu.matmul %129, %127, %cst_114 {dimension_numbers = #tpu.dot_dimension_numbers<[1], [0], [0], [1], [0, 0, 1, 1], [], []>} : vector<8x8xbf16>, vector<8x256xbf16>, vector<8x256xf32> -> vector<8x256xf32>
    %131 = arith.addf %126, %130 : vector<8x256xf32>
    %c0_115 = arith.constant 0 : index
    %c145_116 = arith.constant 145 : index
    %132 = vector.load %arg10[%c0_115, %c145_116] : memref<8x512xbf16, #tpu.memory_space<vmem>>, vector<8x256xbf16>
    %c8_117 = arith.constant 8 : index
    %c0_118 = arith.constant 0 : index
    %c0_119 = arith.constant 0 : index
    %133 = vector.load %arg6[%c8_117, %c0_118, %c0_119] : memref<9x8x8xbf16, #tpu.memory_space<vmem>>, vector<1x8x8xbf16>
    %134 = vector.shape_cast %133 : vector<1x8x8xbf16> to vector<8x8xbf16>
    %cst_120 = arith.constant dense<0.000000e+00> : vector<8x256xf32>
    %135 = tpu.matmul %134, %132, %cst_120 {dimension_numbers = #tpu.dot_dimension_numbers<[1], [0], [0], [1], [0, 0, 1, 1], [], []>} : vector<8x8xbf16>, vector<8x256xbf16>, vector<8x256xf32> -> vector<8x256xf32>
    %136 = vector.broadcast %15 : vector<1x256xf32> to vector<8x256xf32>
    %137 = arith.mulf %135, %136 : vector<8x256xf32>
    %138 = arith.addf %131, %137 : vector<8x256xf32>
    %c0_121 = arith.constant 0 : index
    %c0_122 = arith.constant 0 : index
    %139 = vector.load %arg7[%c0_121, %c0_122] : memref<8x1xf32, #tpu.memory_space<vmem>>, vector<8x1xf32>
    %140 = vector.broadcast %139 : vector<8x1xf32> to vector<8x256xf32>
    %141 = arith.addf %138, %140 : vector<8x256xf32>
    %cst_123 = arith.constant 0.000000e+00 : f32
    %142 = vector.broadcast %cst_123 : f32 to vector<8x256xf32>
    %143 = arith.maximumf %141, %142 : vector<8x256xf32>
    %144 = arith.truncf %143 : vector<8x256xf32> to vector<8x256xbf16>
    %c0_124 = arith.constant 0 : index
    %c0_125 = arith.constant 0 : index
    %c0_126 = arith.constant 0 : index
    %145 = vector.load %arg8[%c0_124, %c0_125, %c0_126] : memref<1x8x256xbf16, #tpu.memory_space<vmem>>, vector<1x8x256xbf16>
    %146 = vector.shape_cast %145 : vector<1x8x256xbf16> to vector<8x256xbf16>
    %147 = vector.shape_cast %144 : vector<8x256xbf16> to vector<1x8x256xbf16>
    tpu.vector_store %arg8[%c0_124, %c0_125, %c0_126], %147 {strides = array<i32>} : memref<1x8x256xbf16, #tpu.memory_space<vmem>>, vector<1x8x256xbf16>,
    return
  }
  func.func @transform_0(%arg0: i32) -> (i32, i32, i32) {
    %c0_i32 = arith.constant 0 : i32
    %c0_i32_0 = arith.constant 0 : i32
    %c0_i32_1 = arith.constant 0 : i32
    return %arg0, %c0_i32, %c0_i32_0 : i32, i32, i32
  }
  func.func @transform_1(%arg0: i32) -> (i32, i32, i32) {
    %c0_i32 = arith.constant 0 : i32
    %c0_i32_0 = arith.constant 0 : i32
    %c0_i32_1 = arith.constant 0 : i32
    return %arg0, %c0_i32, %c0_i32_0 : i32, i32, i32
  }
  func.func @transform_2(%arg0: i32) -> (i32, i32) {
    %c0_i32 = arith.constant 0 : i32
    %c0_i32_0 = arith.constant 0 : i32
    %c0_i32_1 = arith.constant 0 : i32
    return %c0_i32, %c0_i32_0 : i32, i32
  }
  func.func @transform_3(%arg0: i32) -> (i32, i32, i32) {
    %c0_i32 = arith.constant 0 : i32
    %c0_i32_0 = arith.constant 0 : i32
    %c0_i32_1 = arith.constant 0 : i32
    %c0_i32_2 = arith.constant 0 : i32
    return %c0_i32, %c0_i32_0, %c0_i32_1 : i32, i32, i32
  }
  func.func @transform_4(%arg0: i32) -> (i32, i32) {
    %c0_i32 = arith.constant 0 : i32
    %c0_i32_0 = arith.constant 0 : i32
    %c0_i32_1 = arith.constant 0 : i32
    return %c0_i32, %c0_i32_0 : i32, i32
  }
  func.func @transform_5(%arg0: i32) -> (i32, i32, i32) {
    %c0_i32 = arith.constant 0 : i32
    %c0_i32_0 = arith.constant 0 : i32
    %c0_i32_1 = arith.constant 0 : i32
    %c0_i32_2 = arith.constant 0 : i32
    return %c0_i32, %c0_i32_0, %c0_i32_1 : i32, i32, i32
  }
  func.func @transform_6(%arg0: i32) -> (i32, i32) {
    %c0_i32 = arith.constant 0 : i32
    %c0_i32_0 = arith.constant 0 : i32
    %c0_i32_1 = arith.constant 0 : i32
    return %c0_i32, %c0_i32_0 : i32, i32
  }
  func.func @transform_7(%arg0: i32) -> (i32, i32, i32) {
    %c0_i32 = arith.constant 0 : i32
    %c0_i32_0 = arith.constant 0 : i32
    %c0_i32_1 = arith.constant 0 : i32
    return %arg0, %c0_i32, %c0_i32_0 : i32, i32, i32
  }
}

</mosaic_0001>

<bundles_post_ra>
// kernel: unet_up_forward.1
= control target key start
LH: loop header
LB: loop body
LE: loop exit
PB: predicated region body
PF: predicated region fallthrough
CT: control target
= control target key end

     0   :  { %s1773_s24 = smov 0   ;;  %s2043_s0 = inlined_call_operand.vmem [shape: bf16[2,8,256], index: 0, kind: input, shape index: {}]   ;;  %s2044_s1 = inlined_call_operand.vmem [shape: bf16[2,8,256], index: 1, kind: input, shape index: {}]   ;;  %s2045_s2 = inlined_call_operand.vmem [shape: f32[2,256], index: 2, kind: input, shape index: {}]   ;;  %s2046_s3 = inlined_call_operand.vmem [shape: bf16[9,8,16], index: 3, kind: input, shape index: {}]   ;;  %s2047_s4 = inlined_call_operand.vmem [shape: f32[8,1], index: 4, kind: input, shape index: {}]   ;;  %s2048_s5 = inlined_call_operand.vmem [shape: bf16[9,8,8], index: 5, kind: input, shape index: {}]   ;;  %s2049_s6 = inlined_call_operand.vmem [shape: f32[8,1], index: 6, kind: input, shape index: {}]   ;;  %s2050_s7 = inlined_call_operand.vmem [shape: bf16[2,8,256], index: 7, kind: output, shape index: {}]  }
   0x1 LB: > { %s1607_s25 = sadd.s32 4294967295, %s1722_s24   ;;  %p1611_p0 = scmp.ge.s32.totalorder %s1722_s24, 1  ;;  %s1722_s24 = sphi %s1773_s24, %s17_s24  }
   0x2   : > { %p247_p1 = scmp.lt.s32.totalorder %s1722_s24, 3 }
   0x4   : > { %p248_p2 = pnand %p1611_p0, %p247_p1 }
   0x5   : > { %p284_p3 = scmp.lt.s32.totalorder (!%p248_p2), %s1607_s25, 1  ;;  %s1725_s10 = smov (!%p248_p2), 17  }
   0x6   : > { %251 = sbr.rel (%p248_p2) target bundleno = 772 (0x304), region = 48  ;;  %s1726_s11 = smov (!%p248_p2), 16  }
   0x7   : > { %s1727_s12 = smov (!%p248_p2), 15   ;;  %s1728_s13 = smov (!%p248_p2), 1  }
   0x8   : > { %s1729_s14 = smov (!%p248_p2), 127   ;;  %s1730_s15 = smov (!%p248_p2), 113  }
   0x9   : > { %s1731_s16 = smov (!%p248_p2), 112   ;;  %s1732_s17 = smov (!%p248_p2), 111  }
   0xb   : > { %v1724_v0 = vmov 0   ;;  %s2052_s25 = smov (!%p284_p3, %s1607_s25), 1  ;;  %v913_v9 = vld [vmem:[%s2047_s4] sm:$0xff]  ;;  %vm337_vm0 = vcmask 138240   ;;  %vm342_vm1 = vcmask 130048   ;;  %vm469_vm2 = vcmask 121856  }
   0xc   : > { %300 = vst [vmem:[#allocation2] sm:$0xf] %v1724_v0  ;;  %301 = vst [vmem:[#allocation2 + $0x10] sm:$0xf] %v1724_v0  ;;  %378 = vmatprep.mubr.bf16.mxu0 %v1724_v0  ;;  %450 = vmatprep.mubr.bf16.mxu1 %v1724_v0  ;;  %s1790_s26 = sshll.u32 %s2052_s25, 3  ;;  %vm541_vm3 = vcmask 7168   ;;  %v388_v62 = vlaneseq }
   0xd   : > { %302 = vst [vmem:[#allocation2 + $0xc] sm:$0xf] %v1724_v0  ;;  %303 = vst [vmem:[#allocation2 + $0x1c] sm:$0xf] %v1724_v0  ;;  %1704 = vset.pattern.permute.xlu0 %v1724_v0  ;;  %s288_s29 = scalar_lea.vmem %s2043_s0, %s1790_s26  ;;  %s293_s9 = scalar_lea.vmem %s2044_s1, %s1790_s26  ;;  %v317_v16 = vld [vmem:[%s2046_s3] sm:$0xf] }
   0xe   : > { %304 = vst [vmem:[#allocation3] sm:$0xf] %v1724_v0  ;;  %305 = vst [vmem:[#allocation3 + $0xc] sm:$0xf] %v1724_v0  ;;  %v306_v1 = vld [vmem:[%s288_s29] sm:$0xff]  ;;  %vm679_vm4 = vcmask 1039360  }
   0xf   : > { %v308_v2 = vld [vmem:[%s293_s9] sm:$0xff]  ;;  %307 = vst [vmem:[#allocation2 + $0x4] sm:$0xff] %v306_v1  ;;  %v1625_v28 = vld [vmem:[%s2046_s3 + $0x8] sm:$0xf]  ;;  %v1627_v33 = vld [vmem:[%s2046_s3 + $0xc] sm:$0xf] }
  0x10   : > { %309 = vst [vmem:[#allocation2 + $0x14] sm:$0xff] %v308_v2  ;;  %v1635_v6 = vcombine.high %v306_v1, %v308_v2  ;;  %v1634_v8 = vcombine.low %v306_v1, %v308_v2  ;;  %v1623_v24 = vld [vmem:[%s2046_s3 + $0x4] sm:$0xf]  ;;  %v1629_v37 = vld [vmem:[%s2046_s3 + $0x10] sm:$0xf]  ;;  %vm740_vm5 = vcmask 924672  }
  0x11   : > { %v1633_v45 = vld [vmem:[%s2046_s3 + $0x14] sm:$0xf]  ;;  %v1638_v46 = vld [vmem:[%s2046_s3 + $0x18] sm:$0xf]  ;;  %vm801_vm6 = vcmask 916480   ;;  %vm860_vm7 = vcmask 908288  }
  0x12   : > { %v1640_v57 = vld [vmem:[%s2046_s3 + $0x1c] sm:$0xf]  ;;  %v1642_v58 = vld [vmem:[%s2046_s3 + $0x20] sm:$0xf]  ;;  %v389_v2 = vshrl.u32 %v388_v62, 7  ;;  %vm955_vm8 = vcmask 1043456  }
  0x13   : > { %v1707_v4 = vld [vmem:[#allocation2] ss:$16 sps:$4 sm:$0xff]   ;;  %vm951_vm9 = vcmask 64512  }
  0x14   : > { %331 = vrot.lane.b32.xlu1 %v1707_v4, %s1725_s10  ;;  %v1709_v7 = vld [vmem:[#allocation2 + $0xc] ss:$16 sps:$4 sm:$0xff]  }
  0x15   : > { %v1888_v59 = vld [vmem:[#allocation3 + $0xc] ss:$0 sps:$4 sm:$0xff]  }
  0x17   : > { %v1705_v3 = vld [vmem:[#allocation2 + $0x4] ss:$16 sps:$4 sm:$0xff]   ;;  %v1708_v5 = vld [vmem:[#allocation2 + $0x8] ss:$16 sps:$4 sm:$0xff]  }
  0x18   : > { %333 = vrot.lane.b32.xlu0 %v1705_v3, %s1725_s10  ;;  %406 = vrot.lane.b32.xlu1 %v1705_v3, %s1726_s11 }
  0x1c   : > { %335 = vrot.lane.b32.xlu0 %v1708_v5, %s1725_s10  ;;  %465 = vrot.lane.b32.xlu1 %v1705_v3, %s1727_s12 }
  0x20   : > { %408 = vrot.lane.b32.xlu0 %v1708_v5, %s1726_s11  ;;  %404 = vrot.lane.b32.xlu1 %v1707_v4, %s1726_s11 }
  0x24   : > { %467 = vrot.lane.b32.xlu0 %v1708_v5, %s1727_s12  ;;  %537 = vrot.lane.b32.xlu1 %v1705_v3, %s1728_s13 }
  0x28   : > { %463 = vrot.lane.b32.xlu0 %v1707_v4, %s1727_s12  ;;  %535 = vrot.lane.b32.xlu1 %v1707_v4, %s1728_s13 }
  0x2c   : > { %539 = vrot.lane.b32.xlu0 %v1708_v5, %s1728_s13  ;;  %677 = vrot.lane.b32.xlu1 %v1709_v7, %s1729_s14 }
  0x30   : > { %675 = vrot.lane.b32.xlu0 %v1635_v6, %s1729_s14  ;;  %738 = vrot.lane.b32.xlu1 %v1709_v7, %s1730_s15 }
  0x34   : > { %736 = vrot.lane.b32.xlu0 %v1635_v6, %s1730_s15  ;;  %734 = vrot.lane.b32.xlu1 %v1634_v8, %s1730_s15 }
  0x38   : > { %673 = vrot.lane.b32.xlu0 %v1634_v8, %s1729_s14  ;;  %799 = vrot.lane.b32.xlu1 %v1709_v7, %s1731_s16 }
  0x3c   : > { %797 = vrot.lane.b32.xlu0 %v1635_v6, %s1731_s16  ;;  %858 = vrot.lane.b32.xlu1 %v1709_v7, %s1732_s17 }
  0x40   : > { %856 = vrot.lane.b32.xlu0 %v1635_v6, %s1732_s17  ;;  %854 = vrot.lane.b32.xlu1 %v1634_v8, %s1732_s17 }
  0x44   : > { %795 = vrot.lane.b32.xlu0 %v1634_v8, %s1731_s16  ;;  %1337 = vrot.lane.b32.xlu1 %v1888_v59, %s1730_s15 }
  0x48   : > { %916 = vperm.xlu0 %1704, %v913_v9  }
  0x4c   : > { %1273 = vrot.lane.b32.xlu0 %v1888_v59, %s1729_s14 }
  0x86   : > { %v332_v11 = vpop.permute.xlu1 %331 }
  0x8a   : > { %v334_v10 = vpop.permute.xlu0 %333  ;;  %v407_v13 = vpop.permute.xlu1 %406 }
  0x8b   : > { %v338_v15 = vsel %vm337_vm0, %v332_v11, %v334_v10 }
  0x8e   : > { %v336_v12 = vpop.permute.xlu0 %335  ;;  %v466_v18 = vpop.permute.xlu1 %465 }
  0x8f   : > { %v339_v14 = vsel %vm337_vm0, %v334_v10, %v336_v12  ;;  %v394_v10 = vsub.s32 1, %v389_v2  ;;  %v1618_v12 = vld [vmem:[%s2045_s2 + $0x1] ss:$2 sm:$0x3] }
  0x90   : > { %360 = vmatprep.subr.bf16.mxu0 %v339_v14 }
  0x91   : > { %361 = vmatpush1.bf16.msra.mxu0 %v338_v15 }
  0x92   : > { %v409_v17 = vpop.permute.xlu0 %408  ;;  %v405_v21 = vpop.permute.xlu1 %404 }
  0x93   : > { %v412_v19 = vsel %vm342_vm1, %v407_v13, %v409_v17  ;;  %v411_v23 = vsel %vm342_vm1, %v405_v21, %v407_v13 }
  0x94   : > { %432 = vmatprep.subr.bf16.mxu1 %v412_v19  ;;  %1622 = vmatmul.mubr.msk.bf16.vlgmr.msra.gmra.mxu0 %vm342_vm1, %v317_v16 }
  0x95   : > { %509 = vmatprep.mubr.bf16.mxu0 %v1724_v0  ;;  %433 = vmatpush1.bf16.msra.mxu1 %v411_v23 }
  0x96   : > { %v468_v20 = vpop.permute.xlu0 %467  ;;  %v538_v27 = vpop.permute.xlu1 %537 }
  0x97   : > { %v471_v22 = vsel %vm469_vm2, %v466_v18, %v468_v20 }
  0x98   : > { %491 = vmatprep.subr.bf16.mxu0 %v471_v22  ;;  %1624 = vmatmul.mubr.msk.bf16.vlgmr.msra.gmra.mxu1 %vm342_vm1, %v1623_v24  ;;  %v1907_v22 = vrot.slane %v1618_v12, %v394_v10 }
  0x99   : > { %581 = vmatprep.mubr.bf16.mxu1 %v1724_v0 }
  0x9a   : > { %v464_v25 = vpop.permute.xlu0 %463  ;;  %v536_v30 = vpop.permute.xlu1 %535 }
  0x9b   : > { %v470_v26 = vsel %vm469_vm2, %v464_v25, %v466_v18  ;;  %v542_v32 = vsel %vm541_vm3, %v536_v30, %v538_v27 }
  0x9c   : > { %492 = vmatpush1.bf16.msra.mxu0 %v470_v26 }
  0x9d   : > { %625 = vmatprep.subr.bf16.mxu0 %v1635_v6  ;;  %v390_v6 = vsub.s32 0, %v389_v2 }
  0x9e   : > { %v540_v29 = vpop.permute.xlu0 %539  ;;  %v678_v35 = vpop.permute.xlu1 %677 }
  0x9f   : > { %1626 = vmatmul.mubr.msk.bf16.vlgmr.msra.gmra.mxu0 %vm342_vm1, %v1625_v28  ;;  %v543_v31 = vsel %vm541_vm3, %v538_v27, %v540_v29  ;;  %v1904_v18 = vrot.slane %v1618_v12, %v390_v6 }
  0xa0   : > { %563 = vmatprep.subr.bf16.mxu1 %v543_v31  ;;  %626 = vmatpush1.bf16.msra.mxu0 %v1634_v8  ;;  %v310_v8 = vld [vmem:[%s2045_s2] ss:$2 sm:$0x3] }
  0xa1   : > { %564 = vmatpush1.bf16.msra.mxu1 %v542_v32  ;;  %643 = vmatprep.mubr.bf16.mxu0 %v1724_v0  ;;  %v1900_v14 = vrot.slane %v310_v8, %v390_v6  ;;  %v1902_v17 = vrot.slane %v310_v8, %v394_v10 }
  0xa2   : > { %v676_v34 = vpop.permute.xlu0 %675  ;;  %v739_v39 = vpop.permute.xlu1 %738 }
  0xa3   : > { %v681_v36 = vsel %vm679_vm4, %v676_v34, %v678_v35 }
  0xa4   : > { %1628 = vmatmul.mubr.msk.bf16.vlgmr.msra.gmra.mxu1 %vm342_vm1, %v1627_v33  ;;  %701 = vmatprep.subr.bf16.mxu1 %v681_v36 }
  0xa5   : > { %719 = vmatprep.mubr.bf16.mxu1 %v1724_v0 }
  0xa6   : > { %v737_v38 = vpop.permute.xlu0 %736  ;;  %v735_v43 = vpop.permute.xlu1 %734 }
  0xa7   : > { %1632 = vmatmul.mubr.msk.bf16.vlgmr.msra.gmra.mxu0 %vm342_vm1, %v1629_v37  ;;  %v742_v40 = vsel %vm740_vm5, %v737_v38, %v739_v39  ;;  %v741_v44 = vsel %vm740_vm5, %v735_v43, %v737_v38 }
  0xa8   : > { %780 = vmatprep.mubr.bf16.mxu0 %v1724_v0  ;;  %762 = vmatprep.subr.bf16.mxu0 %v742_v40 }
  0xa9   : > { %763 = vmatpush1.bf16.msra.mxu0 %v741_v44 }
  0xaa   : > { %v674_v41 = vpop.permute.xlu0 %673  ;;  %v800_v48 = vpop.permute.xlu1 %799 }
  0xab   : > { %v680_v42 = vsel %vm679_vm4, %v674_v41, %v676_v34 }
  0xac   : > { %702 = vmatpush1.bf16.msra.mxu1 %v680_v42 }
  0xae   : > { %v798_v47 = vpop.permute.xlu0 %797  ;;  %v859_v51 = vpop.permute.xlu1 %858 }
  0xaf   : > { %1637 = vmatmul.mubr.msk.bf16.vlgmr.msra.gmra.mxu1 %vm342_vm1, %v1633_v45  ;;  %1639 = vmatmul.mubr.msk.bf16.vlgmr.msra.gmra.mxu0 %vm342_vm1, %v1638_v46  ;;  %v803_v49 = vsel %vm801_vm6, %v798_v47, %v800_v48 }
  0xb0   : > { %841 = vmatprep.mubr.bf16.mxu1 %v1724_v0  ;;  %823 = vmatprep.subr.bf16.mxu1 %v803_v49 }
  0xb1   : > { %900 = vmatprep.mubr.bf16.mxu0 %v1724_v0 }
  0xb2   : > { %v857_v50 = vpop.permute.xlu0 %856  ;;  %v855_v55 = vpop.permute.xlu1 %854 }
  0xb3   : > { %v862_v52 = vsel %vm860_vm7, %v857_v50, %v859_v51  ;;  %v861_v56 = vsel %vm860_vm7, %v855_v55, %v857_v50 }
  0xb4   : > { %882 = vmatprep.subr.bf16.mxu0 %v862_v52 }
  0xb5   : > { %883 = vmatpush1.bf16.msra.mxu0 %v861_v56 }
  0xb6   : > { %v796_v53 = vpop.permute.xlu0 %795 }
  0xb7   : > { %v802_v54 = vsel %vm801_vm6, %v796_v53, %v798_v47 }
  0xb8   : > { %824 = vmatpush1.bf16.msra.mxu1 %v802_v54  ;;  %1643 = vmatmul.mubr.msk.bf16.vlgmr.msra.gmra.mxu0 %vm342_vm1, %v1642_v58 }
  0xb9   : > { %1058 = vmatprep.mubr.bf16.mxu0 %v1724_v0 }
  0xbb   : > { %1641 = vmatmul.mubr.msk.bf16.vlgmr.msra.gmra.mxu1 %vm342_vm1, %v1640_v57 }
  0xbc   : > { %994 = vmatprep.mubr.bf16.mxu1 %v1724_v0 }
  0xc3   : > { %v917_v2 = vpop.permute.xlu0 %916 }
 0x154   : > { %v380_v60 = vpop.f32.mrf.mxu0 }
 0x155   : > { %v398_v21 = vmul.f32 %v1900_v14, %v380_v60 }
 0x156   : > { %v382_v61 = vpop.f32.mrf.mxu0 }
 0x157   : > { %v399_v25 = vmul.f32 %v1902_v17, %v382_v61 }
 0x158   : > { %v384_v63 = vpop.f32.mrf.mxu0  ;;  %v452_v3 = vpop.f32.mrf.mxu1 }
 0x159   : > { %v459_v29 = vadd.f32 %v452_v3, %v398_v21 }
 0x15a   : > { %v385_v1 = vpop.f32.mrf.mxu0  ;;  %v454_v4 = vpop.f32.mrf.mxu1 }
 0x15b   : > { %v460_v33 = vadd.f32 %v454_v4, %v399_v25  ;;  %v1521_v25 = vld [vmem:[%s2049_s6] sm:$0xff] }
 0x15c   : > { %v456_v7 = vpop.f32.mrf.mxu1 }
 0x15e   : > { %v457_v11 = vpop.f32.mrf.mxu1 }
 0x15f   : > { %v511_v5 = vpop.f32.mrf.mxu0 }
 0x160   : > { %v529_v26 = vmul.f32 %v1904_v18, %v511_v5 }
 0x161   : > { %v513_v9 = vpop.f32.mrf.mxu0 }
 0x162   : > { %v530_v30 = vmul.f32 %v1907_v22, %v513_v9  ;;  %v531_v34 = vadd.f32 %v529_v26, %v459_v29  ;;  %v1274_v26 = vpop.permute.xlu0 %1273 }
 0x163   : > { %v515_v13 = vpop.f32.mrf.mxu0 }
 0x164   : > { %v583_v15 = vpop.f32.mrf.mxu1  ;;  %v532_v37 = vadd.f32 %v530_v30, %v460_v33 }
 0x165   : > { %v516_v16 = vpop.f32.mrf.mxu0  ;;  %v590_v31 = vmul.f32 %v583_v15, %v1900_v14 }
 0x166   : > { %v585_v19 = vpop.f32.mrf.mxu1 }
 0x167   : > { %v645_v20 = vpop.f32.mrf.mxu0  ;;  %v591_v35 = vmul.f32 %v585_v19, %v1902_v17  ;;  %v592_v38 = vadd.f32 %v590_v31, %v531_v34 }
 0x168   : > { %v587_v23 = vpop.f32.mrf.mxu1 }
 0x169   : > { %v647_v24 = vpop.f32.mrf.mxu0  ;;  %v593_v41 = vadd.f32 %v591_v35, %v532_v37  ;;  %v652_v45 = vadd.f32 %v645_v20, %v592_v38 }
 0x16a   : > { %v588_v27 = vpop.f32.mrf.mxu1 }
 0x16b   : > { %v649_v28 = vpop.f32.mrf.mxu0  ;;  %v653_v49 = vadd.f32 %v647_v24, %v593_v41  ;;  %v1338_v27 = vpop.permute.xlu1 %1337 }
 0x16d   : > { %v650_v32 = vpop.f32.mrf.mxu0 }
 0x16f   : > { %v721_v36 = vpop.f32.mrf.mxu1  ;;  %v782_v39 = vpop.f32.mrf.mxu0 }
 0x170   : > { %v728_v42 = vmul.f32 %v721_v36, %v1904_v18  ;;  %v789_v51 = vmul.f32 %v782_v39, %v1900_v14 }
 0x171   : > { %v723_v40 = vpop.f32.mrf.mxu1  ;;  %v784_v43 = vpop.f32.mrf.mxu0 }
 0x172   : > { %v729_v46 = vmul.f32 %v723_v40, %v1907_v22  ;;  %v730_v50 = vadd.f32 %v728_v42, %v652_v45  ;;  %v790_v54 = vmul.f32 %v784_v43, %v1902_v17  ;;  %v1650_v43 = vld [vmem:[%s2048_s5 + $0x4] sm:$0xf] }
 0x173   : > { %v725_v44 = vpop.f32.mrf.mxu1  ;;  %v786_v47 = vpop.f32.mrf.mxu0 }
 0x174   : > { %v731_v53 = vadd.f32 %v729_v46, %v653_v49  ;;  %v791_v55 = vadd.f32 %v789_v51, %v730_v50  ;;  %v1653_v49 = vld [vmem:[%s2048_s5 + $0x8] sm:$0xf] }
 0x175   : > { %v726_v48 = vpop.f32.mrf.mxu1  ;;  %v787_v52 = vpop.f32.mrf.mxu0 }
 0x176   : > { %v792_v60 = vadd.f32 %v790_v54, %v731_v53 }
 0x178   : > { %v902_v58 = vpop.f32.mrf.mxu0 }
 0x179   : > { %v909_v61 = vmul.f32 %v902_v58, %v1904_v18  ;;  %v1656_v58 = vld [vmem:[%s2048_s5 + $0xc] sm:$0xf] }
 0x17a   : > { %v904_v1 = vpop.f32.mrf.mxu0 }
 0x17b   : > { %v843_v56 = vpop.f32.mrf.mxu1  ;;  %v910_v4 = vmul.f32 %v904_v1, %v1907_v22 }
 0x17c   : > { %v850_v57 = vadd.f32 %v843_v56, %v791_v55  ;;  %v906_v6 = vpop.f32.mrf.mxu0 }
 0x17d   : > { %v845_v62 = vpop.f32.mrf.mxu1  ;;  %v1664_v6 = vld [vmem:[%s2048_s5 + $0x14] sm:$0xf] }
 0x17e   : > { %v851_v63 = vadd.f32 %v845_v62, %v792_v60  ;;  %v911_v3 = vadd.f32 %v909_v61, %v850_v57  ;;  %v907_v10 = vpop.f32.mrf.mxu0  ;;  %v1659_v62 = vld [vmem:[%s2048_s5 + $0x10] sm:$0xf] }
 0x17f   : > { %v847_v5 = vpop.f32.mrf.mxu1 }
 0x180   : > { %v912_v7 = vadd.f32 %v910_v4, %v851_v63  ;;  %v919_v8 = vadd.f32 %v917_v2, %v911_v3 }
 0x181   : > { %v848_v9 = vpop.f32.mrf.mxu1 }
 0x182   : > { %v920_v11 = vadd.f32 %v917_v2, %v912_v7  ;;  %v921_v12 = vmax.f32 %v919_v8, 0.0  ;;  %v1670_v9 = vld [vmem:[%s2048_s5 + $0x18] sm:$0xf] }
 0x184   : > { %v922_v13 = vmax.f32 %v920_v11, 0.0  ;;  %v1714_v23 = vpack.c.bf16 %v921_v12, %v921_v12 }
 0x186   : > { %v1685_v15 = vpack.c.bf16 %v922_v13, %v921_v12  ;;  %v1715_v24 = vpack.c.bf16 %v922_v13, %v922_v13  ;;  %v1209_v51 = vsel %vm955_vm8, %v1714_v23, 0 }
 0x188   : > { %931 = vst [vmem:[#allocation3 + $0x4] sm:$0xff] %v1685_v15 }
 0x18f   : > { %v1711_v16 = vld [vmem:[#allocation3 + $0x8] ss:$0 sps:$4 sm:$0xff]   ;;  %v932_v19 = vld [vmem:[#allocation3] sm:$0xff] }
 0x190   : > { %v1645_v20 = vcombine.low %v932_v19, %v932_v19  ;;  %947 = vrot.lane.b32.xlu0 %v1711_v16, %s1725_s10  ;;  %v1646_v21 = vcombine.high %v932_v19, %v932_v19  ;;  %v1673_v19 = vld [vmem:[%s2048_s5 + $0x1c] sm:$0xf] }
 0x192   : > { %943 = vrot.lane.b32.xlu1 %v1645_v20, %s1725_s10 }
 0x194   : > { %1011 = vrot.lane.b32.xlu0 %v1646_v21, %s1726_s11 }
 0x196   : > { %945 = vrot.lane.b32.xlu1 %v1646_v21, %s1725_s10 }
 0x198   : > { %1071 = vrot.lane.b32.xlu0 %v1645_v20, %s1727_s12 }
 0x19a   : > { %1009 = vrot.lane.b32.xlu1 %v1645_v20, %s1726_s11 }
 0x19c   : > { %1075 = vrot.lane.b32.xlu0 %v1711_v16, %s1727_s12 }
 0x19e   : > { %1013 = vrot.lane.b32.xlu1 %v1711_v16, %s1726_s11  ;;  %s298_s11 = scalar_lea.vmem %s2050_s7, %s1790_s26 }
 0x1a0   : > { %1401 = vrot.lane.b32.xlu0 %v1888_v59, %s1731_s16 }
 0x1a2   : > { %1073 = vrot.lane.b32.xlu1 %v1646_v21, %s1727_s12 }
 0x1a4   : > { %1137 = vrot.lane.b32.xlu0 %v1646_v21, %s1728_s13 }
 0x1a6   : > { %1135 = vrot.lane.b32.xlu1 %v1645_v20, %s1728_s13 }
 0x1a8   : > { %1269 = vrot.lane.b32.xlu0 %v1714_v23, %s1729_s14 }
 0x1aa   : > { %1139 = vrot.lane.b32.xlu1 %v1711_v16, %s1728_s13 }
 0x1ac   : > { %1335 = vrot.lane.b32.xlu0 %v1715_v24, %s1730_s15 }
 0x1ae   : > { %1271 = vrot.lane.b32.xlu1 %v1715_v24, %s1729_s14 }
 0x1b0   : > { %1397 = vrot.lane.b32.xlu0 %v1714_v23, %s1731_s16 }
 0x1b2   : > { %1333 = vrot.lane.b32.xlu1 %v1714_v23, %s1730_s15 }
 0x1b4   : > { %1461 = vrot.lane.b32.xlu0 %v1715_v24, %s1732_s17 }
 0x1b6   : > { %1399 = vrot.lane.b32.xlu1 %v1715_v24, %s1731_s16 }
 0x1b8   : > { %1524 = vperm.xlu0 %1704, %v1521_v25  }
 0x1ba   : > { %1459 = vrot.lane.b32.xlu1 %v1714_v23, %s1732_s17 }
 0x1be   : > { %1463 = vrot.lane.b32.xlu1 %v1888_v59, %s1732_s17  ;;  %v934_v59 = vld [vmem:[%s2048_s5] sm:$0xf] }
 0x202   : > { %v948_v28 = vpop.permute.xlu0 %947 }
 0x204   : > { %v944_v29 = vpop.permute.xlu1 %943 }
 0x206   : > { %v1012_v30 = vpop.permute.xlu0 %1011 }
 0x208   : > { %v946_v31 = vpop.permute.xlu1 %945 }
 0x209   : > { %v949_v32 = vsel %vm337_vm0, %v944_v29, %v946_v31  ;;  %v950_v33 = vsel %vm337_vm0, %v946_v31, %v948_v28 }
 0x20a   : > { %v957_v34 = vsel %vm955_vm8, %v949_v32, 0  ;;  %1648 = vmatprep.subr.msk.bf16.mxu1 %vm955_vm8, %v950_v33  ;;  %v1072_v35 = vpop.permute.xlu0 %1071 }
 0x20b   : > { %977 = vmatpush1.bf16.msra.mxu1 %v957_v34 }
 0x20c   : > { %v1010_v36 = vpop.permute.xlu1 %1009 }
 0x20d   : > { %v1015_v37 = vsel %vm342_vm1, %v1010_v36, %v1012_v30 }
 0x20e   : > { %1649 = vmatmul.mubr.msk.bf16.vlgmr.msra.gmra.mxu1 %vm951_vm9, %v934_v59  ;;  %v1076_v38 = vpop.permute.xlu0 %1075  ;;  %v1021_v41 = vsel %vm955_vm8, %v1015_v37, 0 }
 0x20f   : > { %1120 = vmatprep.mubr.bf16.mxu1 %v1724_v0 }
 0x210   : > { %v1014_v39 = vpop.permute.xlu1 %1013 }
 0x211   : > { %v1016_v40 = vsel %vm342_vm1, %v1012_v30, %v1014_v39 }
 0x212   : > { %1651 = vmatprep.subr.msk.bf16.mxu0 %vm955_vm8, %v1016_v40  ;;  %v1402_v42 = vpop.permute.xlu0 %1401 }
 0x213   : > { %1041 = vmatpush1.bf16.msra.mxu0 %v1021_v41 }
 0x214   : > { %v1074_v44 = vpop.permute.xlu1 %1073 }
 0x215   : > { %v1077_v45 = vsel %vm469_vm2, %v1072_v35, %v1074_v44  ;;  %v1078_v46 = vsel %vm469_vm2, %v1074_v44, %v1076_v38 }
 0x216   : > { %v1083_v47 = vsel %vm955_vm8, %v1077_v45, 0  ;;  %1654 = vmatprep.subr.msk.bf16.mxu1 %vm955_vm8, %v1078_v46  ;;  %1652 = vmatmul.mubr.msk.bf16.vlgmr.msra.gmra.mxu0 %vm951_vm9, %v1650_v43  ;;  %v1138_v48 = vpop.permute.xlu0 %1137 }
 0x217   : > { %1103 = vmatpush1.bf16.msra.mxu1 %v1083_v47  ;;  %1184 = vmatprep.mubr.bf16.mxu0 %v1724_v0 }
 0x218   : > { %1662 = vmatprep.subr.msk.bf16.mxu1 %vm955_vm8, %v1715_v24  ;;  %v1136_v50 = vpop.permute.xlu1 %1135 }
 0x219   : > { %v1141_v52 = vsel %vm541_vm3, %v1136_v50, %v1138_v48 }
 0x21a   : > { %1655 = vmatmul.mubr.msk.bf16.vlgmr.msra.gmra.mxu1 %vm951_vm9, %v1653_v49  ;;  %v1270_v53 = vpop.permute.xlu0 %1269  ;;  %v1147_v56 = vsel %vm955_vm8, %v1141_v52, 0 }
 0x21b   : > { %1229 = vmatpush1.bf16.msra.mxu1 %v1209_v51  ;;  %1246 = vmatprep.mubr.bf16.mxu1 %v1724_v0 }
 0x21c   : > { %v1140_v54 = vpop.permute.xlu1 %1139 }
 0x21d   : > { %v1142_v55 = vsel %vm541_vm3, %v1138_v48, %v1140_v54 }
 0x21e   : > { %1657 = vmatprep.subr.msk.bf16.mxu0 %vm955_vm8, %v1142_v55  ;;  %v1336_v57 = vpop.permute.xlu0 %1335 }
 0x21f   : > { %1167 = vmatpush1.bf16.msra.mxu0 %v1147_v56  ;;  %v1340_v60 = vsel %vm740_vm5, %v1336_v57, %v1338_v27 }
 0x220   : > { %v1272_v61 = vpop.permute.xlu1 %1271  ;;  %1671 = vmatprep.subr.msk.bf16.mxu1 %vm955_vm8, %v1340_v60 }
 0x221   : > { %v1275_v63 = vsel %vm679_vm4, %v1270_v53, %v1272_v61  ;;  %v1276_v1 = vsel %vm679_vm4, %v1272_v61, %v1274_v26 }
 0x222   : > { %v1281_v2 = vsel %vm955_vm8, %v1275_v63, 0  ;;  %1658 = vmatmul.mubr.msk.bf16.vlgmr.msra.gmra.mxu0 %vm951_vm9, %v1656_v58  ;;  %1668 = vmatprep.subr.msk.bf16.mxu0 %vm955_vm8, %v1276_v1  ;;  %v1398_v7 = vpop.permute.xlu0 %1397 }
 0x223   : > { %1301 = vmatpush1.bf16.msra.mxu0 %v1281_v2  ;;  %1663 = vmatmul.mubr.msk.bf16.vlgmr.msra.gmra.mxu1 %vm951_vm9, %v1659_v62 }
 0x224   : > { %v1334_v3 = vpop.permute.xlu1 %1333  ;;  %1318 = vmatprep.mubr.bf16.mxu0 %v1724_v0  ;;  %1382 = vmatprep.mubr.bf16.mxu1 %v1724_v0 }
 0x225   : > { %v1339_v4 = vsel %vm740_vm5, %v1334_v3, %v1336_v57 }
 0x226   : > { %v1345_v5 = vsel %vm955_vm8, %v1339_v4, 0  ;;  %v1462_v15 = vpop.permute.xlu0 %1461 }
 0x227   : > { %1365 = vmatpush1.bf16.msra.mxu1 %v1345_v5 }
 0x228   : > { %v1400_v8 = vpop.permute.xlu1 %1399 }
 0x229   : > { %v1403_v10 = vsel %vm801_vm6, %v1398_v7, %v1400_v8  ;;  %v1404_v11 = vsel %vm801_vm6, %v1400_v8, %v1402_v42 }
 0x22a   : > { %v1409_v12 = vsel %vm955_vm8, %v1403_v10, 0  ;;  %1669 = vmatmul.mubr.msk.bf16.vlgmr.msra.gmra.mxu0 %vm951_vm9, %v1664_v6  ;;  %1674 = vmatprep.subr.msk.bf16.mxu0 %vm955_vm8, %v1404_v11 }
 0x22b   : > { %1429 = vmatpush1.bf16.msra.mxu0 %v1409_v12  ;;  %1672 = vmatmul.mubr.msk.bf16.vlgmr.msra.gmra.mxu1 %vm951_vm9, %v1670_v9 }
 0x22c   : > { %v1460_v13 = vpop.permute.xlu1 %1459  ;;  %1446 = vmatprep.mubr.bf16.mxu0 %v1724_v0  ;;  %1508 = vmatprep.mubr.bf16.mxu1 %v1724_v0  ;;  %v1676_v0 = vld [vmem:[%s2048_s5 + $0x20] sm:$0xf] }
 0x22d   : > { %v1465_v16 = vsel %vm860_vm7, %v1460_v13, %v1462_v15 }
 0x22e   : > { %v1471_v23 = vsel %vm955_vm8, %v1465_v16, 0 }
 0x230   : > { %v1464_v20 = vpop.permute.xlu1 %1463 }
 0x231   : > { %v1466_v21 = vsel %vm860_vm7, %v1462_v15, %v1464_v20 }
 0x232   : > { %1675 = vmatmul.mubr.msk.bf16.vlgmr.msra.gmra.mxu0 %vm951_vm9, %v1673_v19  ;;  %1677 = vmatprep.subr.msk.bf16.mxu1 %vm955_vm8, %v1466_v21 }
 0x233   : > { %1491 = vmatpush1.bf16.msra.mxu1 %v1471_v23 }
 0x236   : > { %1678 = vmatmul.mubr.msk.bf16.vlgmr.msra.gmra.mxu1 %vm951_vm9, %v1676_v0 }
 0x2ce   : > { %v996_v24 = vpop.f32.mrf.mxu1 }
 0x2cf   : > { %v1003_v36 = vmul.f32 %v996_v24, %v1900_v14  ;;  %v1525_v24 = vpop.permute.xlu0 %1524 }
 0x2d0   : > { %v998_v25 = vpop.f32.mrf.mxu1 }
 0x2d1   : > { %v1004_v39 = vmul.f32 %v998_v25, %v1902_v17 }
 0x2d2   : > { %v1000_v26 = vpop.f32.mrf.mxu1 }
 0x2d4   : > { %v1001_v27 = vpop.f32.mrf.mxu1 }
 0x2d6   : > { %v1060_v28 = vpop.f32.mrf.mxu0 }
 0x2d7   : > { %v1067_v43 = vadd.f32 %v1060_v28, %v1003_v36 }
 0x2d8   : > { %v1062_v29 = vpop.f32.mrf.mxu0 }
 0x2d9   : > { %v1068_v49 = vadd.f32 %v1062_v29, %v1004_v39 }
 0x2da   : > { %v1122_v30 = vpop.f32.mrf.mxu1  ;;  %v1064_v31 = vpop.f32.mrf.mxu0 }
 0x2db   : > { %v1129_v40 = vmul.f32 %v1122_v30, %v1904_v18 }
 0x2dc   : > { %v1124_v32 = vpop.f32.mrf.mxu1  ;;  %v1065_v33 = vpop.f32.mrf.mxu0 }
 0x2dd   : > { %v1130_v44 = vmul.f32 %v1124_v32, %v1907_v22  ;;  %v1131_v48 = vadd.f32 %v1129_v40, %v1067_v43 }
 0x2de   : > { %v1126_v34 = vpop.f32.mrf.mxu1 }
 0x2df   : > { %v1132_v53 = vadd.f32 %v1130_v44, %v1068_v49 }
 0x2e0   : > { %v1127_v35 = vpop.f32.mrf.mxu1 }
 0x2e2   : > { %v1186_v59 = vpop.f32.mrf.mxu0 }
 0x2e3   : > { %v1248_v37 = vpop.f32.mrf.mxu1  ;;  %v1193_v45 = vmul.f32 %v1186_v59, %v1900_v14 }
 0x2e4   : > { %v1188_v38 = vpop.f32.mrf.mxu0 }
 0x2e5   : > { %v1250_v41 = vpop.f32.mrf.mxu1  ;;  %v1194_v50 = vmul.f32 %v1188_v38, %v1902_v17  ;;  %v1195_v54 = vadd.f32 %v1193_v45, %v1131_v48 }
 0x2e6   : > { %v1190_v42 = vpop.f32.mrf.mxu0 }
 0x2e7   : > { %v1252_v46 = vpop.f32.mrf.mxu1  ;;  %v1196_v57 = vadd.f32 %v1194_v50, %v1132_v53  ;;  %v1255_v62 = vadd.f32 %v1248_v37, %v1195_v54 }
 0x2e8   : > { %v1191_v47 = vpop.f32.mrf.mxu0 }
 0x2e9   : > { %v1253_v51 = vpop.f32.mrf.mxu1  ;;  %v1256_v3 = vadd.f32 %v1250_v41, %v1196_v57 }
 0x2ea   : > { %v1320_v52 = vpop.f32.mrf.mxu0 }
 0x2eb   : > { %v1384_v55 = vpop.f32.mrf.mxu1  ;;  %v1327_v58 = vmul.f32 %v1320_v52, %v1904_v18 }
 0x2ec   : > { %v1322_v56 = vpop.f32.mrf.mxu0  ;;  %v1391_v5 = vmul.f32 %v1384_v55, %v1900_v14 }
 0x2ed   : > { %v1386_v60 = vpop.f32.mrf.mxu1  ;;  %v1328_v63 = vmul.f32 %v1322_v56, %v1907_v22  ;;  %v1329_v4 = vadd.f32 %v1327_v58, %v1255_v62 }
 0x2ee   : > { %v1324_v61 = vpop.f32.mrf.mxu0  ;;  %v1392_v9 = vmul.f32 %v1386_v60, %v1902_v17 }
 0x2ef   : > { %v1388_v1 = vpop.f32.mrf.mxu1  ;;  %v1330_v8 = vadd.f32 %v1328_v63, %v1256_v3  ;;  %v1393_v11 = vadd.f32 %v1391_v5, %v1329_v4 }
 0x2f0   : > { %v1325_v2 = vpop.f32.mrf.mxu0 }
 0x2f1   : > { %v1389_v6 = vpop.f32.mrf.mxu1  ;;  %v1394_v16 = vadd.f32 %v1392_v9, %v1330_v8 }
 0x2f2   : > { %v1448_v7 = vpop.f32.mrf.mxu0 }
 0x2f3   : > { %v1455_v15 = vadd.f32 %v1448_v7, %v1393_v11 }
 0x2f4   : > { %v1450_v10 = vpop.f32.mrf.mxu0 }
 0x2f5   : > { %v1456_v23 = vadd.f32 %v1450_v10, %v1394_v16 }
 0x2f6   : > { %v1510_v12 = vpop.f32.mrf.mxu1  ;;  %v1452_v13 = vpop.f32.mrf.mxu0 }
 0x2f7   : > { %v1517_v19 = vmul.f32 %v1510_v12, %v1904_v18 }
 0x2f8   : > { %v1512_v20 = vpop.f32.mrf.mxu1  ;;  %v1453_v21 = vpop.f32.mrf.mxu0 }
 0x2f9   : > { %v1519_v0 = vadd.f32 %v1517_v19, %v1455_v15  ;;  %v1518_v14 = vmul.f32 %v1512_v20, %v1907_v22 }
 0x2fa   : > { %v1514_v25 = vpop.f32.mrf.mxu1 }
 0x2fb   : > { %v1527_v26 = vadd.f32 %v1525_v24, %v1519_v0  ;;  %v1520_v27 = vadd.f32 %v1518_v14, %v1456_v23 }
 0x2fc   : > { %v1515_v17 = vpop.f32.mrf.mxu1 }
 0x2fd   : > { %v1528_v28 = vadd.f32 %v1525_v24, %v1520_v27  ;;  %v1529_v29 = vmax.f32 %v1527_v26, 0.0 }
 0x2ff   : > { %v1530_v30 = vmax.f32 %v1528_v28, 0.0 }
 0x301   : > { %v1686_v31 = vpack.c.bf16 %v1530_v30, %v1529_v29 }
 0x303   : > { %1539 = vst [vmem:[%s298_s11] sm:$0xff] %v1686_v31 }
 0x304 PF: > { %s17_s24 = sadd.s32 1, %s1722_s24  }
 0x305   : > { %p14_p4 = scmp.ge.s32.totalorder %s17_s24, 4  }
 0x307   :  { %16 = sbr.rel (!%p14_p4) target bundleno = 1 (0x1), region = 98 }

</bundles_post_ra>
